<compile_context>
chip_gen: v5e
topology: v5e:2x2
jax: 0.10.0
libtpu: 0.0.40
codegen_flags: <defaults>
</compile_context>

<pallas_src>
import functools

import jax
import jax.numpy as jnp
from jax.experimental import pallas as pl
from jax.experimental.pallas import tpu as pltpu

HIDDEN = 768   # nn.Linear(768, 32)
MID = 32       # nn.Linear(32, 1)
_MIB = 1024 * 1024


def _vmem_limit_bytes():
    """Generation-aware scoped-VMEM limit (v5e/v6e: ~64 MiB, v7x: ~38 MiB)."""
    cap = 128 * _MIB
    try:
        cap = int(pltpu.get_tpu_info().vmem_capacity_bytes)
    except Exception:
        pass
    return min(int(cap * 0.6), 64 * _MIB)


def _estimate_vmem(b_tile, s_tile, emb_itemsize, ragged_tail):
    emb_block = b_tile * s_tile * HIDDEN * emb_itemsize
    mask_block = b_tile * s_tile * 4
    use = 2 * emb_block + 2 * mask_block            # double-buffered streams
    if ragged_tail:
        use += emb_block                             # bounds-selected MXU operand
    use += (HIDDEN * MID + 2 * MID + 2) * 4          # resident weights / biases
    use += b_tile * (HIDDEN + 1) * 4                 # f32 accumulators
    return use + 2 * _MIB                            # layout / compiler slack


def _pick_s_tile(S, b_tile, emb_itemsize, budget, s_tile_target):
    if S <= s_tile_target:
        return S                                     # single S step, full extent
    cand = max(128, (min(s_tile_target, S) // 128) * 128)
    while cand > 128 and _estimate_vmem(b_tile, cand, emb_itemsize,
                                        S % cand != 0) > budget:
        cand -= 128
    return cand


def discriminator_kernel(emb_ref, mask_ref, w1_ref, b1_ref, alpha_ref,
                         w2_ref, b2_ref, out_ref, acc_sum, acc_len,
                         *, seq_len, s_tile):
    s_step = pl.program_id(1)
    n_s = pl.num_programs(1)

    @pl.when(s_step == 0)
    def _init():
        acc_sum[...] = jnp.zeros_like(acc_sum)
        acc_len[...] = jnp.zeros_like(acc_len)

    mask = mask_ref[...]          # (Bt, St) f32
    emb = emb_ref[...]            # (Bt, St, H) bf16

    def accumulate(keep, emb_used, mask_len):
        # Fused masking + sequence reduction on the MXU:
        #   (Bt, 1, St) @ (Bt, St, H) -> (Bt, 1, H), f32 accumulation.
        partial = jnp.einsum("bks,bsh->bkh", keep[:, None, :], emb_used,
                             preferred_element_type=jnp.float32)
        acc_sum[...] += partial                                    # (Bt, 1, H)
        acc_len[...] += mask_len.sum(axis=1, keepdims=True)        # (Bt, 1)

    if (seq_len % s_tile) != 0:
        # Ragged last S tile: bounds-select (0 * NaN garbage would poison sums).
        last = n_s - 1

        @pl.when(s_step != last)
        def _full_tile():
            keep = jnp.where(mask != 0.0, 1.0, 0.0).astype(emb.dtype)
            accumulate(keep, emb, mask)

        @pl.when(s_step == last)
        def _tail_tile():
            col = jax.lax.broadcasted_iota(jnp.int32, mask.shape, 1)
            inb = (s_step * s_tile + col) < seq_len                # (Bt, St)
            keep = jnp.where(jnp.logical_and(inb, mask != 0.0),
                             1.0, 0.0).astype(emb.dtype)
            emb_safe = jnp.where(inb[:, :, None], emb,
                                 jnp.zeros((), emb.dtype))
            accumulate(keep, emb_safe, jnp.where(inb, mask, 0.0))
    else:
        keep = jnp.where(mask != 0.0, 1.0, 0.0).astype(emb.dtype)
        accumulate(keep, emb, mask)

    @pl.when(s_step == n_s - 1)
    def _finalize():
        # All-zero mask rows -> inf/nan, exactly like the PyTorch reference.
        mean_pool = acc_sum[...][:, 0, :] / acc_len[...]           # (Bt, H)
        h = jnp.dot(mean_pool, w1_ref[...],
                    preferred_element_type=jnp.float32) + b1_ref[...]   # (Bt, 32)
        alpha = alpha_ref[0, 0]                                    # SMEM scalar
        h = jnp.where(h >= 0.0, h, alpha * h)                      # PReLU
        out = jnp.dot(h, w2_ref[...],
                      preferred_element_type=jnp.float32) + b2_ref[0, 0]  # (Bt, 1)
        out_ref[...] = out.astype(out_ref.dtype)


def mean_pooling_discriminator(inputs_embeds, attention_mask, labels,
                               w1, b1, alpha, w2, b2, *, s_tile_target=1024):
    """Returns (logits, None) — matches MeanPoolingDiscriminator.forward."""
    del labels  # unused by the PyTorch forward (loss head returns None)
    B, S, H = inputs_embeds.shape
    assert H == HIDDEN

    # HBM-streaming bound (~1 flop/byte): stream the embeddings as bf16.
    # (Ideally this cast fuses with whatever produced inputs_embeds upstream.)
    if inputs_embeds.dtype == jnp.float32:
        inputs_embeds = inputs_embeds.astype(jnp.bfloat16)
    mask = attention_mask.astype(jnp.float32)

    b_tile = B if B <= 8 else 8
    # TODO(synk): for v7x with B <= 8 (grid[0] == 1) split the S axis across
    # the two TensorCores via core_map and combine the (Bt, 768) partial sums.

    vmem_limit = _vmem_limit_bytes()
    emb_itemsize = jnp.dtype(inputs_embeds.dtype).itemsize
    s_tile = _pick_s_tile(S, b_tile, emb_itemsize, vmem_limit, s_tile_target)

    grid = (pl.cdiv(B, b_tile), pl.cdiv(S, s_tile))
    smem = pltpu.MemorySpace.SMEM
    kernel = functools.partial(discriminator_kernel, seq_len=S, s_tile=s_tile)

    out = pl.pallas_call(
        kernel,
        out_shape=jax.ShapeDtypeStruct((B, 1), jnp.float32),
        grid_spec=pltpu.PrefetchScalarGridSpec(
            num_scalar_prefetch=0,
            grid=grid,
            in_specs=[
                pl.BlockSpec((b_tile, s_tile, HIDDEN), lambda b, s: (b, s, 0)),  # embeds
                pl.BlockSpec((b_tile, s_tile), lambda b, s: (b, s)),             # mask
                pl.BlockSpec((HIDDEN, MID), lambda b, s: (0, 0)),                # w1 (resident)
                pl.BlockSpec((1, MID), lambda b, s: (0, 0)),                     # b1 (resident)
                pl.BlockSpec(memory_space=smem),                                 # PReLU alpha
                pl.BlockSpec((MID, 1), lambda b, s: (0, 0)),                     # w2 (resident)
                pl.BlockSpec(memory_space=smem),                                 # b2
            ],
            out_specs=pl.BlockSpec((b_tile, 1), lambda b, s: (b, 0)),
            scratch_shapes=[
                pltpu.VMEM((b_tile, 1, HIDDEN), jnp.float32),   # masked-sum accumulator
                pltpu.VMEM((b_tile, 1), jnp.float32),           # length accumulator
            ],
        ),
        compiler_params=pltpu.CompilerParams(
            dimension_semantics=("parallel", "arbitrary"),
            vmem_limit_bytes=vmem_limit,
        ),
    )(inputs_embeds, mask, w1, b1, alpha, w2, b2)

    return out, None


def _reference(inputs_embeds, attention_mask, w1, b1, alpha, w2, b2):
    emb = inputs_embeds.astype(jnp.float32)
    mask = attention_mask.astype(jnp.float32)
    masked = jnp.where(mask[:, :, None] == 0.0, 0.0, emb)
    sum_ = masked.sum(axis=1)
    lengths = mask.sum(axis=1, keepdims=True)
    mean_pool = sum_ / lengths
    h = mean_pool @ w1 + b1
    h = jnp.where(h >= 0.0, h, alpha[0, 0] * h)
    return h @ w2 + b2


if __name__ == "__main__":
    key = jax.random.PRNGKey(0)
    k_emb, k_w1, k_b1, k_w2, k_b2, k_emb2 = jax.random.split(key, 6)

    # Deterministic synthetic parameters (shapes from the module __init__),
    # stored transposed vs. PyTorch so the kernel computes x @ W + b.
    w1 = jax.random.normal(k_w1, (HIDDEN, MID), jnp.float32) * 0.02
    b1 = jax.random.normal(k_b1, (1, MID), jnp.float32) * 0.02
    alpha = jnp.full((1, 1), 0.25, jnp.float32)   # nn.PReLU default init
    w2 = jax.random.normal(k_w2, (MID, 1), jnp.float32) * 0.02
    b2 = jax.random.normal(k_b2, (1, 1), jnp.float32) * 0.02

    # --- Test 1: small shapes, single grid step over S. ---
    B, S = 2, 8
    inputs_embeds = jax.random.normal(
        k_emb, (B, S, HIDDEN), jnp.float32).astype(jnp.bfloat16)
    attention_mask = jnp.array(
        [[1.0] * 5 + [0.0] * 3,
         [1.0] * 8], dtype=jnp.float32)
    labels = jnp.zeros((B,), jnp.int32)   # unused by forward

    logits, loss = mean_pooling_discriminator(
        inputs_embeds, attention_mask, labels, w1, b1, alpha, w2, b2)
    logits = jax.block_until_ready(logits)

    ref = _reference(inputs_embeds, attention_mask, w1, b1, alpha, w2, b2)
    assert logits.shape == (B, 1)
    assert loss is None
    assert jnp.allclose(logits, ref, atol=2e-2, rtol=2e-2), (logits, ref)

    # --- Test 2: exercises batch tiling (B=10 > b_tile=8, ragged batch tail),
    #     multi-step S accumulation and the ragged S tail (640 % 256 = 128),
    #     all WITHOUT any host-side padding. ---
    B2, S2 = 10, 640
    emb2 = jax.random.normal(
        k_emb2, (B2, S2, HIDDEN), jnp.float32).astype(jnp.bfloat16)
    valid = jnp.array([300, 640, 17, 1, 639, 256, 100, 512, 5, 384])
    mask2 = (jnp.arange(S2)[None, :] < valid[:, None]).astype(jnp.float32)

    logits2, _ = mean_pooling_discriminator(
        emb2, mask2, jnp.zeros((B2,), jnp.int32), w1, b1, alpha, w2, b2,
        s_tile_target=256)
    logits2 = jax.block_until_ready(logits2)

    ref2 = _reference(emb2, mask2, w1, b1, alpha, w2, b2)
    assert logits2.shape == (B2, 1)
    assert jnp.allclose(logits2, ref2, atol=2e-2, rtol=2e-2), (logits2, ref2)

    print("KERNEL_OK")
</pallas_src>

<mosaic_0001>
module attributes {stable_mosaic.version = 11 : i64} {
  func.func @discriminator_kernel(%arg0: i32, %arg1: i32, %arg2: memref<2x8x768xbf16, #tpu.memory_space<vmem>>, %arg3: memref<2x8xf32, #tpu.memory_space<vmem>>, %arg4: memref<768x32xf32, #tpu.memory_space<vmem>>, %arg5: memref<1x32xf32, #tpu.memory_space<vmem>>, %arg6: memref<1x1xf32, #tpu.memory_space<smem>>, %arg7: memref<32x1xf32, #tpu.memory_space<vmem>>, %arg8: memref<1x1xf32, #tpu.memory_space<smem>>, %arg9: memref<2x1xf32, #tpu.memory_space<vmem>>, %arg10: memref<2x1x768xf32, #tpu.memory_space<vmem>>, %arg11: memref<2x1xf32, #tpu.memory_space<vmem>>) attributes {dimension_semantics = [#tpu.dimension_semantics<parallel>, #tpu.dimension_semantics<arbitrary>], iteration_bounds = array<i64: 1, 1>, scalar_prefetch = 0 : i64, scratch_operands = 2 : i64, tpu.core_type = #tpu.core_type<tc>, window_params = [{transform_indices = @transform_0, window_bounds = array<i64: 2, 8, 768>}, {transform_indices = @transform_1, window_bounds = array<i64: 2, 8>}, {pipeline_mode = #tpu.pipeline_mode<synchronous>, transform_indices = @transform_2, window_bounds = array<i64: 768, 32>}, {pipeline_mode = #tpu.pipeline_mode<synchronous>, transform_indices = @transform_3, window_bounds = array<i64: 1, 32>}, {transform_indices = @transform_4, window_bounds = array<i64: 1, 1>}, {pipeline_mode = #tpu.pipeline_mode<synchronous>, transform_indices = @transform_5, window_bounds = array<i64: 32, 1>}, {transform_indices = @transform_6, window_bounds = array<i64: 1, 1>}, {transform_indices = @transform_7, window_bounds = array<i64: 2, 1>}]} {
    %c0_i32 = arith.constant 0 : i32
    %0 = arith.cmpi eq, %arg1, %c0_i32 : i32
    %1 = arith.extui %0 : i1 to i32
    %c0_i32_0 = arith.constant 0 : i32
    %2 = arith.cmpi ne, %1, %c0_i32_0 : i32
    scf.if %2 {
      %cst_21 = arith.constant 0.000000e+00 : f32
      %24 = vector.broadcast %cst_21 : f32 to vector<2x1x768xf32>
      %c0_22 = arith.constant 0 : index
      %c0_23 = arith.constant 0 : index
      %c0_24 = arith.constant 0 : index
      %25 = vector.load %arg10[%c0_22, %c0_23, %c0_24] : memref<2x1x768xf32, #tpu.memory_space<vmem>>, vector<2x1x768xf32>
      tpu.vector_store %arg10[%c0_22, %c0_23, %c0_24], %24 {strides = array<i32>} : memref<2x1x768xf32, #tpu.memory_space<vmem>>, vector<2x1x768xf32>,
      %cst_25 = arith.constant 0.000000e+00 : f32
      %26 = vector.broadcast %cst_25 : f32 to vector<2x1xf32>
      %c0_26 = arith.constant 0 : index
      %c0_27 = arith.constant 0 : index
      %27 = vector.load %arg11[%c0_26, %c0_27] : memref<2x1xf32, #tpu.memory_space<vmem>>, vector<2x1xf32>
      tpu.vector_store %arg11[%c0_26, %c0_27], %26 {strides = array<i32>} : memref<2x1xf32, #tpu.memory_space<vmem>>, vector<2x1xf32>,
    } else {
    }
    %c0 = arith.constant 0 : index
    %c0_1 = arith.constant 0 : index
    %3 = vector.load %arg3[%c0, %c0_1] : memref<2x8xf32, #tpu.memory_space<vmem>>, vector<2x8xf32>
    %c0_2 = arith.constant 0 : index
    %c0_3 = arith.constant 0 : index
    %c0_4 = arith.constant 0 : index
    %4 = vector.load %arg2[%c0_2, %c0_3, %c0_4] : memref<2x8x768xbf16, #tpu.memory_space<vmem>>, vector<2x8x768xbf16>
    %cst = arith.constant 0.000000e+00 : f32
    %5 = vector.broadcast %cst : f32 to vector<2x8xf32>
    %6 = arith.cmpf one, %3, %5 : vector<2x8xf32>
    %cst_5 = arith.constant 1.000000e+00 : f32
    %cst_6 = arith.constant 0.000000e+00 : f32
    %7 = vector.broadcast %cst_5 : f32 to vector<2x8xf32>
    %8 = vector.broadcast %cst_6 : f32 to vector<2x8xf32>
    %9 = arith.select %6, %7, %8 : vector<2x8xi1>, vector<2x8xf32>
    %10 = arith.truncf %9 : vector<2x8xf32> to vector<2x8xbf16>
    %11 = vector.shape_cast %10 : vector<2x8xbf16> to vector<2x1x8xbf16>
    "tpu.trace_start"() <{level = 10 : i32, message = "bks,bsh->bkh"}> : () -> ()
    %cst_7 = arith.constant dense<0.000000e+00> : vector<2x1x768xf32>
    %12 = tpu.matmul %11, %4, %cst_7 {dimension_numbers = #tpu.dot_dimension_numbers<[2], [1], [1], [2], [0, 0, 0, 1, 1, 2], [0], [0]>} : vector<2x1x8xbf16>, vector<2x8x768xbf16>, vector<2x1x768xf32> -> vector<2x1x768xf32>
    "tpu.trace_stop"() : () -> ()
    %c0_8 = arith.constant 0 : index
    %c0_9 = arith.constant 0 : index
    %c0_10 = arith.constant 0 : index
    %13 = vector.load %arg10[%c0_8, %c0_9, %c0_10] : memref<2x1x768xf32, #tpu.memory_space<vmem>>, vector<2x1x768xf32>
    %14 = arith.addf %13, %12 : vector<2x1x768xf32>
    %c0_11 = arith.constant 0 : index
    %c0_12 = arith.constant 0 : index
    %c0_13 = arith.constant 0 : index
    %15 = vector.load %arg10[%c0_11, %c0_12, %c0_13] : memref<2x1x768xf32, #tpu.memory_space<vmem>>, vector<2x1x768xf32>
    tpu.vector_store %arg10[%c0_11, %c0_12, %c0_13], %14 {strides = array<i32>} : memref<2x1x768xf32, #tpu.memory_space<vmem>>, vector<2x1x768xf32>,
    %c0_14 = arith.constant 0 : index
    %c0_15 = arith.constant 0 : index
    %16 = vector.load %arg11[%c0_14, %c0_15] : memref<2x1xf32, #tpu.memory_space<vmem>>, vector<2x1xf32>
    %cst_16 = arith.constant dense<0.000000e+00> : vector<2xf32>
    %17 = vector.multi_reduction <add>, %3, %cst_16 [1] : vector<2x8xf32> to vector<2xf32>
    %18 = vector.shape_cast %17 : vector<2xf32> to vector<2x1xf32>
    %19 = arith.addf %16, %18 : vector<2x1xf32>
    %c0_17 = arith.constant 0 : index
    %c0_18 = arith.constant 0 : index
    %20 = vector.load %arg11[%c0_17, %c0_18] : memref<2x1xf32, #tpu.memory_space<vmem>>, vector<2x1xf32>
    tpu.vector_store %arg11[%c0_17, %c0_18], %19 {strides = array<i32>} : memref<2x1xf32, #tpu.memory_space<vmem>>, vector<2x1xf32>,
    %c0_i32_19 = arith.constant 0 : i32
    %21 = arith.cmpi eq, %arg1, %c0_i32_19 : i32
    %22 = arith.extui %21 : i1 to i32
    %c0_i32_20 = arith.constant 0 : i32
    %23 = arith.cmpi ne, %22, %c0_i32_20 : i32
    scf.if %23 {
      %c0_21 = arith.constant 0 : index
      %c0_22 = arith.constant 0 : index
      %c0_23 = arith.constant 0 : index
      %24 = vector.load %arg10[%c0_21, %c0_22, %c0_23] : memref<2x1x768xf32, #tpu.memory_space<vmem>>, vector<2x1x768xf32>
      %25 = vector.shape_cast %24 : vector<2x1x768xf32> to vector<2x768xf32>
      %c0_24 = arith.constant 0 : index
      %c0_25 = arith.constant 0 : index
      %26 = vector.load %arg11[%c0_24, %c0_25] : memref<2x1xf32, #tpu.memory_space<vmem>>, vector<2x1xf32>
      %27 = vector.broadcast %26 : vector<2x1xf32> to vector<2x768xf32>
      %28 = arith.divf %25, %27 : vector<2x768xf32>
      %c0_26 = arith.constant 0 : index
      %c0_27 = arith.constant 0 : index
      %29 = vector.load %arg4[%c0_26, %c0_27] : memref<768x32xf32, #tpu.memory_space<vmem>>, vector<768x32xf32>
      %cst_28 = arith.constant dense<0.000000e+00> : vector<2x32xf32>
      %30 = tpu.matmul %28, %29, %cst_28 {dimension_numbers = #tpu.dot_dimension_numbers<[1], [0], [0], [1], [0, 0, 1, 1], [], []>} : vector<2x768xf32>, vector<768x32xf32>, vector<2x32xf32> -> vector<2x32xf32>
      %c0_29 = arith.constant 0 : index
      %c0_30 = arith.constant 0 : index
      %31 = vector.load %arg5[%c0_29, %c0_30] : memref<1x32xf32, #tpu.memory_space<vmem>>, vector<1x32xf32>
      %32 = vector.broadcast %31 : vector<1x32xf32> to vector<2x32xf32>
      %33 = arith.addf %30, %32 : vector<2x32xf32>
      %c0_31 = arith.constant 0 : index
      %c0_32 = arith.constant 0 : index
      %34 = memref.load %arg6[%c0_31, %c0_32] : memref<1x1xf32, #tpu.memory_space<smem>>
      %cst_33 = arith.constant 0.000000e+00 : f32
      %35 = vector.broadcast %cst_33 : f32 to vector<2x32xf32>
      %36 = arith.cmpf oge, %33, %35 : vector<2x32xf32>
      %37 = vector.broadcast %34 : f32 to vector<2x32xf32>
      %38 = arith.mulf %37, %33 : vector<2x32xf32>
      %39 = arith.select %36, %33, %38 : vector<2x32xi1>, vector<2x32xf32>
      %c0_34 = arith.constant 0 : index
      %c0_35 = arith.constant 0 : index
      %40 = vector.load %arg7[%c0_34, %c0_35] : memref<32x1xf32, #tpu.memory_space<vmem>>, vector<32x1xf32>
      %cst_36 = arith.constant dense<0.000000e+00> : vector<2x1xf32>
      %41 = tpu.matmul %39, %40, %cst_36 {dimension_numbers = #tpu.dot_dimension_numbers<[1], [0], [0], [1], [0, 0, 1, 1], [], []>} : vector<2x32xf32>, vector<32x1xf32>, vector<2x1xf32> -> vector<2x1xf32>
      %c0_37 = arith.constant 0 : index
      %c0_38 = arith.constant 0 : index
      %42 = memref.load %arg8[%c0_37, %c0_38] : memref<1x1xf32, #tpu.memory_space<smem>>
      %43 = vector.broadcast %42 : f32 to vector<2x1xf32>
      %44 = arith.addf %41, %43 : vector<2x1xf32>
      %c0_39 = arith.constant 0 : index
      %c0_40 = arith.constant 0 : index
      %45 = vector.load %arg9[%c0_39, %c0_40] : memref<2x1xf32, #tpu.memory_space<vmem>>, vector<2x1xf32>
      tpu.vector_store %arg9[%c0_39, %c0_40], %44 {strides = array<i32>} : memref<2x1xf32, #tpu.memory_space<vmem>>, vector<2x1xf32>,
    } else {
    }
    return
  }
  func.func @transform_0(%arg0: i32, %arg1: i32) -> (i32, i32, i32) {
    %c0_i32 = arith.constant 0 : i32
    %c0_i32_0 = arith.constant 0 : i32
    return %arg0, %arg1, %c0_i32 : i32, i32, i32
  }
  func.func @transform_1(%arg0: i32, %arg1: i32) -> (i32, i32) {
    %c0_i32 = arith.constant 0 : i32
    return %arg0, %arg1 : i32, i32
  }
  func.func @transform_2(%arg0: i32, %arg1: i32) -> (i32, i32) {
    %c0_i32 = arith.constant 0 : i32
    %c0_i32_0 = arith.constant 0 : i32
    %c0_i32_1 = arith.constant 0 : i32
    return %c0_i32, %c0_i32_0 : i32, i32
  }
  func.func @transform_3(%arg0: i32, %arg1: i32) -> (i32, i32) {
    %c0_i32 = arith.constant 0 : i32
    %c0_i32_0 = arith.constant 0 : i32
    %c0_i32_1 = arith.constant 0 : i32
    return %c0_i32, %c0_i32_0 : i32, i32
  }
  func.func @transform_4(%arg0: i32, %arg1: i32) -> (i32, i32) {
    %c0_i32 = arith.constant 0 : i32
    %c0_i32_0 = arith.constant 0 : i32
    %c0_i32_1 = arith.constant 0 : i32
    return %c0_i32, %c0_i32_0 : i32, i32
  }
  func.func @transform_5(%arg0: i32, %arg1: i32) -> (i32, i32) {
    %c0_i32 = arith.constant 0 : i32
    %c0_i32_0 = arith.constant 0 : i32
    %c0_i32_1 = arith.constant 0 : i32
    return %c0_i32, %c0_i32_0 : i32, i32
  }
  func.func @transform_6(%arg0: i32, %arg1: i32) -> (i32, i32) {
    %c0_i32 = arith.constant 0 : i32
    %c0_i32_0 = arith.constant 0 : i32
    %c0_i32_1 = arith.constant 0 : i32
    return %c0_i32, %c0_i32_0 : i32, i32
  }
  func.func @transform_7(%arg0: i32, %arg1: i32) -> (i32, i32) {
    %c0_i32 = arith.constant 0 : i32
    %c0_i32_0 = arith.constant 0 : i32
    return %arg0, %c0_i32 : i32, i32
  }
}

</mosaic_0001>

<bundles_post_ra>
// kernel: tpu_custom_call.1
= control target key start
LH: loop header
LB: loop body
LE: loop exit
PB: predicated region body
PF: predicated region fallthrough
CT: control target
= control target key end

     0   :  { %v33_v0 = vlaneseq  ;;  %vm343_vm0 = vcmask 58368   ;;  %vm53_vm1 = vcmask 1040384   ;;  %vm81_vm2 = vcmask 1043456   ;;  %s1118_s1 = inlined_call_operand.vmem [shape: f32[2,8], index: 1, kind: input, shape index: {}]   ;;  %s1119_s0 = inlined_call_operand.vmem [shape: bf16[2,8,768], index: 0, kind: input, shape index: {}]   ;;  %s1120_s2 = inlined_call_operand.vmem [shape: f32[768,32], index: 2, kind: input, shape index: {}]   ;;  %s1121_s3 = inlined_call_operand.vmem [shape: f32[1,32], index: 3, kind: input, shape index: {}]   ;;  %s1122_s5 = inlined_call_operand.vmem [shape: f32[32,1], index: 5, kind: input, shape index: {}]   ;;  %s1123_s4 = inlined_call_operand.<no memory space> [shape: f32[1,1], index: 4, kind: input, shape index: {}]   ;;  %s1124_s6 = inlined_call_operand.<no memory space> [shape: f32[1,1], index: 6, kind: input, shape index: {}]   ;;  %s1125_s7 = inlined_call_operand.vmem [shape: f32[2,1], index: 7, kind: output, shape index: {}]  }
   0x1   :  { %v41_v1 = vld [vmem:[%s1118_s1] sm:$0x3]  ;;  %v43_v3 = vld [vmem:[%s1119_s0 + $0x8] sm:$0xff]  ;;  %v44_v7 = vld [vmem:[%s1119_s0 + $0x10] sm:$0xff]  ;;  %v693_v9 = vmov 0.0   ;;  %vm77_vm5 = vcmask 64512  }
   0x2   :  { %v42_v2 = vld [vmem:[%s1119_s0] sm:$0xff]  ;;  %vm744_vm3 = vcmp.lt.s32.totalorder %v33_v0, 768  ;;  %v344_v5 = vsel %vm343_vm0, %v41_v1, 0.0  ;;  %vm48_vm4 = vcmp.ne.f32.partialorder %v41_v1, 0.0  ;;  %v45_v8 = vld [vmem:[%s1119_s0 + $0x18] sm:$0xff]  ;;  %v67_v12 = vunpack.c.l.b16 %v43_v3  ;;  %v47_v39 = vld [vmem:[%s1119_s0 + $0x28] sm:$0xff] }
   0x3   :  { %v66_v6 = vunpack.c.h.b16 %v42_v2  ;;  %37 = vst.msk [vmem:[#allocation2] sm:$0x3f] %vm744_vm3, %v693_v9  ;;  %345 = vadd.xlane.f32.xlu0 %v344_v5  ;;  %v49_v10 = vsel %vm48_vm4, 1.0, %v693_v9  ;;  %v65_v11 = vunpack.c.l.b16 %v42_v2  ;;  %v68_v13 = vunpack.c.h.b16 %v43_v3  ;;  %v46_v47 = vld [vmem:[%s1119_s0 + $0x20] sm:$0xff]  ;;  %v409_v1 = vld [vmem:[%s1120_s2 + $0x78] sm:$0xff]  ;;  %v456_v4 = vld [vmem:[%s1120_s2 + $0x1f0] sm:$0xff] }
   0x4   :  { %38 = vst.msk [vmem:[#allocation2 + $0x6] sm:$0x3f] %vm744_vm3, %v693_v9  ;;  %v50_v14 = vpack.c.bf16 %v49_v10, %v49_v10  ;;  %v69_v16 = vunpack.c.l.b16 %v44_v7  ;;  %v70_v17 = vunpack.c.h.b16 %v44_v7  ;;  %v73_v19 = vpack.c.b16 %v67_v12, %v67_v12  ;;  %v425_v2 = vld [vmem:[%s1120_s2 + $0xf8] sm:$0xff]  ;;  %v407_v10 = vld [vmem:[%s1120_s2 + $0x68] sm:$0xff]  ;;  %v406_v12 = vld [vmem:[%s1120_s2 + $0x60] sm:$0xff] }
   0x5   :  { %v72_v15 = vpack.c.b16 %v66_v6, %v66_v6  ;;  %v71_v18 = vpack.c.b16 %v65_v11, %v65_v11  ;;  %v74_v20 = vpack.c.b16 %v68_v13, %v68_v13  ;;  %v183_v21 = vunpack.c.l.b16 %v45_v8  ;;  %v423_v11 = vld [vmem:[%s1120_s2 + $0xe8] sm:$0xff]  ;;  %v422_v13 = vld [vmem:[%s1120_s2 + $0xe0] sm:$0xff] }
   0x6   :  { %v52_v22 = vrot.slane %v50_v14, 3  ;;  %v75_v24 = vpack.c.b16 %v69_v16, %v69_v16  ;;  %v76_v25 = vpack.c.b16 %v70_v17, %v70_v17  ;;  %v89_v27 = vsel %vm81_vm2, %v73_v19, 0  ;;  %v421_v16 = vld [vmem:[%s1120_s2 + $0xd8] sm:$0xff] }
   0x7   :  { %v86_v23 = vsel %vm81_vm2, %v72_v15, 0  ;;  %v83_v26 = vsel %vm81_vm2, %v71_v18, 0  ;;  %v92_v28 = vsel %vm81_vm2, %v74_v20, 0  ;;  %v189_v29 = vpack.c.b16 %v183_v21, %v183_v21  ;;  %v405_v15 = vld [vmem:[%s1120_s2 + $0x58] sm:$0xff] }
   0x8   :  { %120 = vmatpush.bf16.msra.mxu2 %v86_v23  ;;  %v56_v30 = vsel %vm53_vm1, %v50_v14, %v52_v22  ;;  %107 = vmatpush.bf16.msra.mxu3 %v83_v26  ;;  %v95_v31 = vsel %vm81_vm2, %v75_v24, 0  ;;  %v98_v32 = vsel %vm81_vm2, %v76_v25, 0  ;;  %v184_v33 = vunpack.c.h.b16 %v45_v8  ;;  %v408_v8 = vld [vmem:[%s1120_s2 + $0x70] sm:$0xff] }
   0x9   :  { %v671_v34 = vpack.i.b16 %v56_v30, %v56_v30  ;;  %159 = vmatpush.bf16.msra.mxu0 %v95_v31  ;;  %172 = vmatpush.bf16.msra.mxu1 %v98_v32  ;;  %v199_v37 = vsel %vm81_vm2, %v189_v29, 0  ;;  %v187_v40 = vunpack.c.l.b16 %v47_v39  ;;  %v188_v41 = vunpack.c.h.b16 %v47_v39  ;;  %v420_v29 = vld [vmem:[%s1120_s2 + $0xd0] sm:$0xff]  ;;  %v418_v39 = vld [vmem:[%s1120_s2 + $0xc0] sm:$0xff] }
   0xa   :  { %v190_v35 = vpack.c.b16 %v184_v33, %v184_v33  ;;  %v59_v46 = vunpack.i.h.s16 %v56_v30  ;;  %vm39_vm6 = vcmask 1024   ;;  %v186_v48 = vunpack.c.h.b16 %v46_v47  ;;  %v294_v26 = vld [vmem:[#allocation2] sm:$0x3f] }
   0xb   :  { %v61_v36 = vperm.slane %v671_v34, 0  ;;  %v193_v42 = vpack.c.b16 %v187_v40, %v187_v40  ;;  %v194_v43 = vpack.c.b16 %v188_v41, %v188_v41  ;;  %v185_v49 = vunpack.c.l.b16 %v46_v47  ;;  %40 = vst.msk [vmem:[#allocation3] sm:$0x3] %vm39_vm6, %v693_v9  ;;  %v424_v9 = vld [vmem:[%s1120_s2 + $0xf0] sm:$0xff]  ;;  %v401_v40 = vld [vmem:[%s1120_s2 + $0x38] sm:$0xff] }
   0xc   :  { %133 = vmatpush.bf16.msrb.mxu2 %v89_v27  ;;  %146 = vmatpush.bf16.msrb.mxu3 %v92_v28  ;;  %v202_v38 = vsel %vm81_vm2, %v190_v35, 0  ;;  %v178_v50 = vpack.i.b16 %v59_v46, %v59_v46  ;;  %v192_v51 = vpack.c.b16 %v186_v48, %v186_v48  ;;  %v694_v56 = vmov 0   ;;  %v404_v28 = vld [vmem:[%s1120_s2 + $0x50] sm:$0xff]  ;;  %v417_v41 = vld [vmem:[%s1120_s2 + $0xb8] sm:$0xff]  ;;  %v399_v48 = vld [vmem:[%s1120_s2 + $0x28] sm:$0xff] }
   0xd   :  { %673 = vmatmul.msk.bf16.vlgmr.msra.gmra.mxu2 %vm77_vm5, %v61_v36  ;;  %672 = vmatmul.msk.bf16.vlgmr.msra.gmra.mxu3 %vm77_vm5, %v61_v36  ;;  %v211_v44 = vsel %vm81_vm2, %v193_v42, 0  ;;  %v214_v45 = vsel %vm81_vm2, %v194_v43, 0  ;;  %v191_v52 = vpack.c.b16 %v185_v49, %v185_v49  ;;  %vm319_vm7 = vcmask 1041408   ;;  %v400_v42 = vld [vmem:[%s1120_s2 + $0x30] sm:$0xff]  ;;  %v441_v46 = vld [vmem:[%s1120_s2 + $0x178] sm:$0xff]  ;;  %v415_v49 = vld [vmem:[%s1120_s2 + $0xa8] sm:$0xff] }
   0xe   :  { %676 = vmatmul.msk.bf16.vlgmr.msra.gmra.mxu0 %vm77_vm5, %v61_v36  ;;  %677 = vmatmul.msk.bf16.vlgmr.msra.gmra.mxu1 %vm77_vm5, %v61_v36  ;;  %v208_v53 = vsel %vm81_vm2, %v192_v51, 0  ;;  %v179_v55 = vperm.slane %v178_v50, 0  ;;  %vm321_vm8 = vcmask 1043459   ;;  %vm323_vm9 = vcmask 1044483   ;;  %v457_v47 = vld [vmem:[%s1120_s2 + $0x1f8] sm:$0xff] }
   0xf   :  { %v205_v54 = vsel %vm81_vm2, %v191_v52, 0  ;;  %262 = vmatpush.bf16.msrb.mxu1 %v208_v53  ;;  %687 = vset.pattern.permute.xlu0 %v694_v56  ;;  %vm325_vm10 = vcmask 1042432   ;;  %v398_v52 = vld [vmem:[%s1120_s2 + $0x20] sm:$0xff]  ;;  %vm642_vm4 = vcmask 261120  }
  0x10   :  { %223 = vmatpush.bf16.msra.mxu2 %v199_v37  ;;  %236 = vmatpush.bf16.msra.mxu3 %v202_v38  ;;  %v419_v37 = vld [vmem:[%s1120_s2 + $0xc8] sm:$0xff]  ;;  %v402_v38 = vld [vmem:[%s1120_s2 + $0x40] sm:$0xff] }
  0x11   :  { %249 = vmatpush.bf16.msrb.mxu0 %v205_v54  ;;  %v414_v53 = vld [vmem:[%s1120_s2 + $0xa0] sm:$0xff] }
  0x12   :  { %v342_v57 = vld [vmem:[#allocation3] sm:$0x3] }
  0x13   :  { %531 = vmatpush.msra.mxu1 %v425_v2  ;;  %v295_v2 = vld [vmem:[#allocation2 + $0x6] sm:$0x3f] }
  0x15   :  { %511 = vmatpush.msra.mxu0 %v409_v1  ;;  %532 = vmatpush.msra.mxu1 %v424_v9  ;;  %v397_v9 = vld [vmem:[%s1120_s2 + $0x18] sm:$0xff] }
  0x17   :  { %512 = vmatpush.msra.mxu0 %v408_v8  ;;  %533 = vmatpush.msra.mxu1 %v423_v11  ;;  %v440_v11 = vld [vmem:[%s1120_s2 + $0x170] sm:$0xff] }
  0x19   :  { %513 = vmatpush.msra.mxu0 %v407_v10  ;;  %534 = vmatpush.msra.mxu1 %v422_v13  ;;  %v413_v10 = vld [vmem:[%s1120_s2 + $0x98] sm:$0xff]  ;;  %v412_v13 = vld [vmem:[%s1120_s2 + $0x90] sm:$0xff] }
  0x1b   :  { %514 = vmatpush.msra.mxu0 %v406_v12  ;;  %535 = vmatpush.msra.mxu1 %v421_v16  ;;  %v396_v12 = vld [vmem:[%s1120_s2 + $0x10] sm:$0xff]  ;;  %v395_v16 = vld [vmem:[%s1120_s2 + $0x8] sm:$0xff] }
  0x1d   :  { %674 = vmatmul.msk.bf16.vlgmr.msrb.gmra.mxu2 %vm77_vm5, %v61_v36  ;;  %675 = vmatmul.msk.bf16.vlgmr.msrb.gmra.mxu3 %vm77_vm5, %v61_v36  ;;  %v403_v36 = vld [vmem:[%s1120_s2 + $0x48] sm:$0xff] }
  0x1e   :  { %275 = vmatpush.bf16.msrb.mxu2 %v211_v44  ;;  %288 = vmatpush.bf16.msrb.mxu3 %v214_v45  ;;  %v416_v45 = vld [vmem:[%s1120_s2 + $0xb0] sm:$0xff] }
  0x1f   :  { %681 = vmatmul.msk.bf16.vlgmr.msrb.gmra.mxu1 %vm77_vm5, %v179_v55  ;;  %680 = vmatmul.msk.bf16.vlgmr.msrb.gmra.mxu0 %vm77_vm5, %v179_v55 }
  0x20   :  { %515 = vmatpush.msra.mxu0 %v405_v15  ;;  %536 = vmatpush.msra.mxu1 %v420_v29  ;;  %v455_v15 = vld [vmem:[%s1120_s2 + $0x1e8] sm:$0xff]  ;;  %v488_v29 = vld [vmem:[%s1120_s2 + $0x2f0] sm:$0xff] }
  0x22   :  { %516 = vmatpush.msra.mxu0 %v404_v28  ;;  %537 = vmatpush.msra.mxu1 %v419_v37  ;;  %v472_v28 = vld [vmem:[%s1120_s2 + $0x270] sm:$0xff]  ;;  %v486_v37 = vld [vmem:[%s1120_s2 + $0x2e0] sm:$0xff] }
  0x24   :  { %517 = vmatpush.msra.mxu0 %v403_v36  ;;  %538 = vmatpush.msra.mxu1 %v418_v39  ;;  %v470_v36 = vld [vmem:[%s1120_s2 + $0x260] sm:$0xff]  ;;  %v449_v39 = vld [vmem:[%s1120_s2 + $0x1b8] sm:$0xff] }
  0x26   :  { %518 = vmatpush.msra.mxu0 %v402_v38  ;;  %539 = vmatpush.msra.mxu1 %v417_v41  ;;  %v433_v38 = vld [vmem:[%s1120_s2 + $0x138] sm:$0xff] }
  0x27   :  { %v485_v41 = vld [vmem:[%s1120_s2 + $0x2d8] sm:$0xff] }
  0x28   :  { %519 = vmatpush.msra.mxu0 %v401_v40  ;;  %540 = vmatpush.msra.mxu1 %v416_v45  ;;  %v469_v40 = vld [vmem:[%s1120_s2 + $0x258] sm:$0xff]  ;;  %v484_v45 = vld [vmem:[%s1120_s2 + $0x2d0] sm:$0xff] }
  0x2a   :  { %520 = vmatpush.msra.mxu0 %v400_v42  ;;  %541 = vmatpush.msra.mxu1 %v415_v49  ;;  %v432_v42 = vld [vmem:[%s1120_s2 + $0x130] sm:$0xff]  ;;  %v483_v49 = vld [vmem:[%s1120_s2 + $0x2c8] sm:$0xff] }
  0x2c   :  { %521 = vmatpush.msra.mxu0 %v399_v48  ;;  %542 = vmatpush.msra.mxu1 %v414_v53  ;;  %v467_v48 = vld [vmem:[%s1120_s2 + $0x248] sm:$0xff]  ;;  %v482_v53 = vld [vmem:[%s1120_s2 + $0x2c0] sm:$0xff] }
  0x2d   :  { %678 = vmatmul.msk.bf16.vlgmr.msra.gmra.mxu2 %vm77_vm5, %v179_v55  ;;  %679 = vmatmul.msk.bf16.vlgmr.msra.gmra.mxu3 %vm77_vm5, %v179_v55 }
  0x2e   :  { %551 = vmatpush.msra.mxu2 %v441_v46  ;;  %571 = vmatpush.msra.mxu3 %v457_v47  ;;  %v431_v46 = vld [vmem:[%s1120_s2 + $0x128] sm:$0xff] }
  0x2f   :  { %522 = vmatpush.msra.mxu0 %v398_v52  ;;  %543 = vmatpush.msra.mxu1 %v413_v10  ;;  %v447_v47 = vld [vmem:[%s1120_s2 + $0x1a8] sm:$0xff]  ;;  %v466_v52 = vld [vmem:[%s1120_s2 + $0x240] sm:$0xff]  ;;  %v460_v10 = vld [vmem:[%s1120_s2 + $0x210] sm:$0xff] }
  0x30   :  { %552 = vmatpush.msra.mxu2 %v440_v11  ;;  %572 = vmatpush.msra.mxu3 %v456_v4 }
  0x31   :  { %523 = vmatpush.msra.mxu0 %v397_v9  ;;  %544 = vmatpush.msra.mxu1 %v412_v13  ;;  %v477_v9 = vld [vmem:[%s1120_s2 + $0x298] sm:$0xff]  ;;  %v459_v13 = vld [vmem:[%s1120_s2 + $0x208] sm:$0xff] }
  0x32   :  { %573 = vmatpush.msra.mxu3 %v455_v15  ;;  %v458_v15 = vld [vmem:[%s1120_s2 + $0x200] sm:$0xff] }
  0x33   :  { %524 = vmatpush.msra.mxu0 %v396_v12  ;;  %v476_v12 = vld [vmem:[%s1120_s2 + $0x290] sm:$0xff] }
  0x35   :  { %525 = vmatpush.msra.mxu0 %v395_v16  ;;  %v474_v16 = vld [vmem:[%s1120_s2 + $0x280] sm:$0xff] }
  0x3d   :  { %682 = vmatmul.msk.bf16.vlgmr.msrb.gmra.mxu2 %vm77_vm5, %v179_v55  ;;  %683 = vmatmul.msk.bf16.vlgmr.msrb.gmra.mxu3 %vm77_vm5, %v179_v55 }
  0x76   :  { %v346_v58 = vpop.xlane.xlu0 %345 }
  0x77   :  { %v347_v59 = vadd.f32 %v346_v58, %v342_v57 }
  0x79   :  { %349 = vst.msk [vmem:[#allocation3] sm:$0x3] %vm39_vm6, %v347_v59 }
  0x80   :  { %v355_v60 = vld [vmem:[#allocation3] sm:$0x3] }
  0x81   :  { %358 = vperm.xlu0 %687, %v355_v60  }
  0x8b   :  { %v161_v61 = vpop.f32.mrf.mxu0  ;;  %v174_v62 = vpop.f32.mrf.mxu1 }
  0x8c   :  { %v311_v17 = vrot.slane %v161_v61, 4  ;;  %v312_v21 = vrot.slane %v174_v62, 3 }
  0x90   :  { %v122_v63 = vpop.f32.mrf.mxu2  ;;  %v109_v0 = vpop.f32.mrf.mxu3 }
  0x91   :  { %v308_v14 = vrot.slane %v122_v63, 7 }
  0x93   :  { %v176_v3 = vpop.f32.mrf.mxu1  ;;  %v163_v5 = vpop.f32.mrf.mxu0  ;;  %v318_v18 = vsel %vm53_vm1, %v109_v0, %v308_v14  ;;  %v439_v14 = vld [vmem:[%s1120_s2 + $0x168] sm:$0xff] }
  0x94   :  { %553 = vmatpush.msra.mxu2 %v439_v14  ;;  %v475_v14 = vld [vmem:[%s1120_s2 + $0x288] sm:$0xff] }
  0x98   :  { %v124_v6 = vpop.f32.mrf.mxu2  ;;  %v111_v7 = vpop.f32.mrf.mxu3 }
  0x9c   :  { %v264_v27 = vpop.f32.mrf.mxu1  ;;  %v251_v30 = vpop.f32.mrf.mxu0 }
  0x9d   :  { %v314_v57 = vrot.slane %v251_v30, 6  ;;  %v315_v59 = vrot.slane %v264_v27, 5  ;;  %v452_v27 = vld [vmem:[%s1120_s2 + $0x1d0] sm:$0xff]  ;;  %v435_v30 = vld [vmem:[%s1120_s2 + $0x148] sm:$0xff] }
  0xa0   :  { %v135_v19 = vpop.f32.mrf.mxu2  ;;  %v148_v20 = vpop.f32.mrf.mxu3 }
  0xa1   :  { %v309_v22 = vrot.slane %v135_v19, 6  ;;  %v310_v23 = vrot.slane %v148_v20, 5  ;;  %v454_v19 = vld [vmem:[%s1120_s2 + $0x1e0] sm:$0xff] }
  0xa2   :  { %574 = vmatpush.msra.mxu3 %v454_v19  ;;  %v394_v20 = vld [vmem:[%s1120_s2] sm:$0xff] }
  0xa3   :  { %v320_v24 = vsel %vm319_vm7, %v318_v18, %v309_v22  ;;  %v322_v25 = vsel %vm321_vm8, %v310_v23, %v311_v17  ;;  %v411_v17 = vld [vmem:[%s1120_s2 + $0x88] sm:$0xff]  ;;  %v438_v18 = vld [vmem:[%s1120_s2 + $0x160] sm:$0xff]  ;;  %526 = vmatpush.msra.mxu0 %v394_v20  ;;  %v437_v22 = vld [vmem:[%s1120_s2 + $0x158] sm:$0xff] }
  0xa4   :  { %v324_v31 = vsel %vm323_vm9, %v322_v25, %v312_v21  ;;  %v266_v43 = vpop.f32.mrf.mxu1  ;;  %v253_v44 = vpop.f32.mrf.mxu0  ;;  %545 = vmatpush.msra.mxu1 %v411_v17  ;;  %554 = vmatpush.msra.mxu2 %v438_v18  ;;  %v410_v21 = vld [vmem:[%s1120_s2 + $0x80] sm:$0xff]  ;;  %v453_v23 = vld [vmem:[%s1120_s2 + $0x1d8] sm:$0xff] }
  0xa5   :  { %v326_v32 = vsel %vm325_vm10, %v320_v24, %v324_v31  ;;  %v473_v24 = vld [vmem:[%s1120_s2 + $0x278] sm:$0xff]  ;;  %575 = vmatpush.msra.mxu3 %v453_v23  ;;  %v451_v31 = vld [vmem:[%s1120_s2 + $0x1c8] sm:$0xff]  ;;  %v448_v43 = vld [vmem:[%s1120_s2 + $0x1b0] sm:$0xff] }
  0xa6   :  { %v334_v33 = vadd.f32 %v326_v32, %v294_v26  ;;  %546 = vmatpush.msra.mxu1 %v410_v21  ;;  %555 = vmatpush.msra.mxu2 %v437_v22  ;;  %v489_v25 = vld [vmem:[%s1120_s2 + $0x2f8] sm:$0xff]  ;;  %v436_v26 = vld [vmem:[%s1120_s2 + $0x150] sm:$0xff]  ;;  %v471_v32 = vld [vmem:[%s1120_s2 + $0x268] sm:$0xff] }
  0xa7   :  { %591 = vmatpush.msrb.mxu0 %v473_v24  ;;  %576 = vmatpush.msra.mxu3 %v452_v27  ;;  %v468_v44 = vld [vmem:[%s1120_s2 + $0x250] sm:$0xff] }
  0xa8   :  { %340 = vst.msk [vmem:[#allocation2] sm:$0x3f] %vm744_vm3, %v334_v33  ;;  %v137_v34 = vpop.f32.mrf.mxu2  ;;  %v150_v35 = vpop.f32.mrf.mxu3  ;;  %611 = vmatpush.msrb.mxu1 %v489_v25  ;;  %556 = vmatpush.msra.mxu2 %v436_v26  ;;  %v487_v33 = vld [vmem:[%s1120_s2 + $0x2e8] sm:$0xff] }
  0xa9   :  { %592 = vmatpush.msrb.mxu0 %v472_v28  ;;  %577 = vmatpush.msra.mxu3 %v451_v31  ;;  %v434_v34 = vld [vmem:[%s1120_s2 + $0x140] sm:$0xff] }
  0xaa   :  { %612 = vmatpush.msrb.mxu1 %v488_v29  ;;  %557 = vmatpush.msra.mxu2 %v435_v30  ;;  %v450_v35 = vld [vmem:[%s1120_s2 + $0x1c0] sm:$0xff] }
  0xab   :  { %593 = vmatpush.msrb.mxu0 %v471_v32  ;;  %578 = vmatpush.msra.mxu3 %v450_v35 }
  0xac   :  { %613 = vmatpush.msrb.mxu1 %v487_v33  ;;  %558 = vmatpush.msra.mxu2 %v434_v34 }
  0xad   :  { %594 = vmatpush.msrb.mxu0 %v470_v36  ;;  %579 = vmatpush.msra.mxu3 %v449_v39 }
  0xae   :  { %614 = vmatpush.msrb.mxu1 %v486_v37  ;;  %559 = vmatpush.msra.mxu2 %v433_v38 }
  0xaf   :  { %595 = vmatpush.msrb.mxu0 %v469_v40  ;;  %580 = vmatpush.msra.mxu3 %v448_v43  ;;  %v353_v34 = vld [vmem:[#allocation2] sm:$0x3f] }
  0xb0   :  { %v225_v50 = vpop.f32.mrf.mxu2  ;;  %v238_v51 = vpop.f32.mrf.mxu3  ;;  %615 = vmatpush.msrb.mxu1 %v485_v41  ;;  %560 = vmatpush.msra.mxu2 %v432_v42 }
  0xb1   :  { %v313_v56 = vrot.slane %v238_v51, 7  ;;  %596 = vmatpush.msrb.mxu0 %v468_v44  ;;  %581 = vmatpush.msra.mxu3 %v447_v47  ;;  %v446_v51 = vld [vmem:[%s1120_s2 + $0x1a0] sm:$0xff]  ;;  %v639_v47 = vld [vmem:[%s1122_s5 + $0x18] sm:$0xff] }
  0xb2   :  { %616 = vmatpush.msrb.mxu1 %v484_v45  ;;  %561 = vmatpush.msra.mxu2 %v431_v46 }
  0xb3   :  { %v327_v58 = vsel %vm53_vm1, %v225_v50, %v313_v56  ;;  %597 = vmatpush.msrb.mxu0 %v467_v48  ;;  %v430_v50 = vld [vmem:[%s1120_s2 + $0x120] sm:$0xff]  ;;  %582 = vmatpush.msra.mxu3 %v446_v51  ;;  %v465_v56 = vld [vmem:[%s1120_s2 + $0x238] sm:$0xff]  ;;  %v638_v48 = vld [vmem:[%s1122_s5 + $0x10] sm:$0xff] }
  0xb4   :  { %v328_v0 = vsel %vm319_vm7, %v327_v58, %v314_v57  ;;  %617 = vmatpush.msrb.mxu1 %v483_v49  ;;  %562 = vmatpush.msra.mxu2 %v430_v50  ;;  %v481_v57 = vld [vmem:[%s1120_s2 + $0x2b8] sm:$0xff]  ;;  %v428_v58 = vld [vmem:[%s1120_s2 + $0x110] sm:$0xff]  ;;  %v637_v49 = vld [vmem:[%s1122_s5 + $0x8] sm:$0xff] }
  0xb5   :  { %598 = vmatpush.msrb.mxu0 %v466_v52  ;;  %v636_v50 = vld [vmem:[%s1122_s5] sm:$0xff] }
  0xb6   :  { %618 = vmatpush.msrb.mxu1 %v482_v53  ;;  %v688_v51 = vld [vmem:[%s1121_s3] ss:$0 sm:$0xff] }
  0xb7   :  { %599 = vmatpush.msrb.mxu0 %v465_v56 }
  0xb8   :  { %v227_v54 = vpop.f32.mrf.mxu2  ;;  %v240_v55 = vpop.f32.mrf.mxu3  ;;  %619 = vmatpush.msrb.mxu1 %v481_v57 }
  0xb9   :  { %v429_v54 = vld [vmem:[%s1120_s2 + $0x118] sm:$0xff] }
  0xba   :  { %v445_v55 = vld [vmem:[%s1120_s2 + $0x198] sm:$0xff]  ;;  %563 = vmatpush.msra.mxu2 %v429_v54 }
  0xbb   :  { %583 = vmatpush.msra.mxu3 %v445_v55 }
  0xbc   :  { %564 = vmatpush.msra.mxu2 %v428_v58 }
  0xc0   :  { %v277_v60 = vpop.f32.mrf.mxu2  ;;  %v290_v61 = vpop.f32.mrf.mxu3 }
  0xc1   :  { %v316_v62 = vrot.slane %v277_v60, 4  ;;  %v317_v63 = vrot.slane %v290_v61, 3  ;;  %v464_v60 = vld [vmem:[%s1120_s2 + $0x230] sm:$0xff] }
  0xc2   :  { %v480_v61 = vld [vmem:[%s1120_s2 + $0x2b0] sm:$0xff]  ;;  %600 = vmatpush.msrb.mxu0 %v464_v60 }
  0xc3   :  { %v329_v1 = vsel %vm321_vm8, %v315_v59, %v316_v62  ;;  %v444_v59 = vld [vmem:[%s1120_s2 + $0x190] sm:$0xff]  ;;  %v427_v62 = vld [vmem:[%s1120_s2 + $0x108] sm:$0xff]  ;;  %620 = vmatpush.msrb.mxu1 %v480_v61 }
  0xc4   :  { %v330_v3 = vsel %vm323_vm9, %v329_v1, %v317_v63  ;;  %584 = vmatpush.msra.mxu3 %v444_v59  ;;  %v443_v63 = vld [vmem:[%s1120_s2 + $0x188] sm:$0xff]  ;;  %565 = vmatpush.msra.mxu2 %v427_v62 }
  0xc5   :  { %v331_v5 = vsel %vm325_vm10, %v328_v0, %v330_v3  ;;  %v463_v0 = vld [vmem:[%s1120_s2 + $0x228] sm:$0xff]  ;;  %v442_v3 = vld [vmem:[%s1120_s2 + $0x180] sm:$0xff] }
  0xc6   :  { %v335_v6 = vadd.f32 %v331_v5, %v295_v2  ;;  %v479_v1 = vld [vmem:[%s1120_s2 + $0x2a8] sm:$0xff]  ;;  %v426_v2 = vld [vmem:[%s1120_s2 + $0x100] sm:$0xff]  ;;  %585 = vmatpush.msra.mxu3 %v443_v63  ;;  %601 = vmatpush.msrb.mxu0 %v463_v0  ;;  %v633_v63 = vstv %s1123_s4 }
  0xc7   :  { %v462_v5 = vld [vmem:[%s1120_s2 + $0x220] sm:$0xff]  ;;  %621 = vmatpush.msrb.mxu1 %v479_v1  ;;  %566 = vmatpush.msra.mxu2 %v426_v2 }
  0xc8   :  { %341 = vst.msk [vmem:[#allocation2 + $0x6] sm:$0x3f] %vm744_vm3, %v335_v6  ;;  %v279_v7 = vpop.f32.mrf.mxu2  ;;  %v292_v8 = vpop.f32.mrf.mxu3  ;;  %v478_v6 = vld [vmem:[%s1120_s2 + $0x2a0] sm:$0xff]  ;;  %586 = vmatpush.msra.mxu3 %v442_v3  ;;  %602 = vmatpush.msrb.mxu0 %v462_v5  ;;  %v641_v3 = vstv %s1124_s6 }
  0xc9   :  { %622 = vmatpush.msrb.mxu1 %v478_v6  ;;  %v461_v8 = vld [vmem:[%s1120_s2 + $0x218] sm:$0xff]  ;;  %658 = vmatpush.msrb.mxu2 %v639_v47 }
  0xca   :  { %603 = vmatpush.msrb.mxu0 %v461_v8 }
  0xcb   :  { %623 = vmatpush.msrb.mxu1 %v477_v9  ;;  %659 = vmatpush.msrb.mxu2 %v638_v48 }
  0xcc   :  { %604 = vmatpush.msrb.mxu0 %v460_v10 }
  0xcd   :  { %624 = vmatpush.msrb.mxu1 %v476_v12  ;;  %660 = vmatpush.msrb.mxu2 %v637_v49 }
  0xce   :  { %605 = vmatpush.msrb.mxu0 %v459_v13 }
  0xcf   :  { %625 = vmatpush.msrb.mxu1 %v475_v14  ;;  %v354_v37 = vld [vmem:[#allocation2 + $0x6] sm:$0x3f]  ;;  %661 = vmatpush.msrb.mxu2 %v636_v50 }
  0xd0   :  { %606 = vmatpush.msrb.mxu0 %v458_v15 }
  0xd1   :  { %626 = vmatpush.msrb.mxu1 %v474_v16 }
  0xf3   :  { %v359_v7 = vpop.permute.xlu0 %358 }
  0xf4   :  { %v360_v11 = vperm.slane %v359_v7, 0  ;;  %v361_v4 = vperm.slane %v359_v7, 1 }
  0xf6   :  { %689 = vrcp.f32 %v360_v11  ;;  %v375_v22 = vand.u32 2147483648, %v360_v11  ;;  %v373_v25 = vand.u32 2147483647, %v360_v11  ;;  %v390_v26 = vand.u32 2147483648, %v361_v4 }
  0xf7   :  { %691 = vrcp.f32 %v361_v4  ;;  %v388_v28 = vand.u32 2147483647, %v361_v4  ;;  %vm369_vm13 = vweird.f32 %v360_v11  ;;  %vm384_vm15 = vweird.f32 %v361_v4 }
  0xf8   :  { %v376_v30 = vor.u32 1.1754944e-38, %v375_v22  ;;  %vm374_vm0 = vcmp.eq.f32.partialorder %v373_v25, 8.507059e+37  ;;  %v391_v33 = vor.u32 1.1754944e-38, %v390_v26 }
  0xf9   :  { %vm389_vm2 = vcmp.eq.f32.partialorder %v388_v28, 8.507059e+37 }
  0xfc   :  { %v690_v17 = vpop.eup %689 }
  0xfd   :  { %v692_v18 = vpop.eup %691  ;;  %v365_v19 = vmul.f32 %v690_v17, %v360_v11  ;;  %vm370_vm11 = vweird.f32 %v690_v17 }
  0xfe   :  { %v380_v20 = vmul.f32 %v692_v18, %v361_v4  ;;  %vm385_vm12 = vweird.f32 %v692_v18  ;;  %vm371_vm14 = vmor %vm369_vm13, %vm370_vm11 }
  0xff   :  { %v366_v21 = vsub.f32 1.0, %v365_v19  ;;  %vm386_vm1 = vmor %vm384_vm15, %vm385_vm12 }
 0x100   :  { %v381_v23 = vsub.f32 1.0, %v380_v20 }
 0x101   :  { %v367_v24 = vmul.f32 %v690_v17, %v366_v21 }
 0x102   :  { %v382_v27 = vmul.f32 %v692_v18, %v381_v23 }
 0x103   :  { %v368_v29 = vadd.f32 %v690_v17, %v367_v24 }
 0x104   :  { %v383_v31 = vadd.f32 %v692_v18, %v382_v27 }
 0x105   :  { %v372_v32 = vsel %vm371_vm14, %v690_v17, %v368_v29 }
 0x106   :  { %v377_v35 = vsel %vm374_vm0, %v376_v30, %v372_v32  ;;  %v387_v36 = vsel %vm386_vm1, %v692_v18, %v383_v31 }
 0x107   :  { %v378_v38 = vmul.f32 %v377_v35, %v353_v34  ;;  %v392_v39 = vsel %vm389_vm2, %v391_v33, %v387_v36 }
 0x108   :  { %v393_v40 = vmul.f32 %v392_v39, %v354_v37 }
 0x109   :  { %496 = vst [vmem:[#allocation1] ss:$9 sm:$0xff] %v378_v38 }
 0x10a   :  { %498 = vst [vmem:[#allocation1 + $0x1] ss:$9 sm:$0xff] %v393_v40 }
 0x111   :  { %v499_v41 = vld [vmem:[#allocation1] sm:$0xff]  ;;  %v500_v42 = vld [vmem:[#allocation1 + $0x9] sm:$0xff]  ;;  %v501_v43 = vld [vmem:[#allocation1 + $0x12] sm:$0xff] }
 0x112   :  { %527 = vmatmul.f32.vlgmr.msra.gmra.mxu0 %v499_v41  ;;  %547 = vmatmul.f32.vlgmr.msra.gmra.mxu1 %v500_v42  ;;  %v502_v44 = vld [vmem:[#allocation1 + $0x1b] sm:$0xff]  ;;  %v503_v45 = vld [vmem:[#allocation1 + $0x24] sm:$0xff]  ;;  %v504_v46 = vld [vmem:[#allocation1 + $0x2d] sm:$0xff] }
 0x113   :  { %567 = vmatmul.f32.vlgmr.msra.gmra.mxu2 %v501_v43  ;;  %587 = vmatmul.f32.vlgmr.msra.gmra.mxu3 %v502_v44 }
 0x11a   :  { %607 = vmatmul.f32.vlgmr.msrb.gmra.mxu0 %v503_v45  ;;  %627 = vmatmul.f32.vlgmr.msrb.gmra.mxu1 %v504_v46 }
 0x18f   :  { %v528_v52 = vpop.f32.mrf.mxu0  ;;  %v548_v54 = vpop.f32.mrf.mxu1 }
 0x190   :  { %v529_v53 = vadd.f32 %v688_v51, %v528_v52 }
 0x192   :  { %v549_v55 = vadd.f32 %v548_v54, %v529_v53 }
 0x196   :  { %v568_v56 = vpop.f32.mrf.mxu2  ;;  %v588_v58 = vpop.f32.mrf.mxu3 }
 0x197   :  { %v569_v57 = vadd.f32 %v568_v56, %v549_v55  ;;  %v608_v60 = vpop.f32.mrf.mxu0  ;;  %v628_v62 = vpop.f32.mrf.mxu1 }
 0x199   :  { %v589_v59 = vadd.f32 %v588_v58, %v569_v57 }
 0x19b   :  { %v609_v61 = vadd.f32 %v608_v60, %v589_v59 }
 0x19d   :  { %v629_v0 = vadd.f32 %v628_v62, %v609_v61 }
 0x19f   :  { %vm632_vm3 = vcmp.ge.f32.partialorder %v629_v0, 0.0  ;;  %v634_v1 = vmul.f32 %v633_v63, %v629_v0 }
 0x1a1   :  { %v635_v2 = vsel %vm632_vm3, %v629_v0, %v634_v1 }
 0x1a2   :  { %684 = vmatmul.msk.f32.vlgmr.msrb.gmra.mxu2 %vm642_vm4, %v635_v2 }
 0x225   :  { %v663_v5 = vpop.f32.mrf.mxu2 }
 0x226   :  { %v664_v6 = vadd.f32 %v663_v5, %v641_v3 }
 0x228   :  { %666 = vst.msk [vmem:[%s1125_s7] sm:$0x3] %vm39_vm6, %v664_v6 }

</bundles_post_ra>
